<compile_context>
chip_gen: v7x
topology: tpu7x:2x2x1
jax: 0.10.0
libtpu: 0.0.40
codegen_flags: <defaults>
</compile_context>

<pallas_src>
import numpy as np
import jax
import jax.numpy as jnp
from jax.experimental import pallas as pl
from jax.experimental.pallas import tpu as pltpu


# ----------------------------------------------------------------------------- kernel
def wsn_gnn_kernel(x_ref, w_ref, att_ref, bias_ref, eattr_ref, mask_ref, c_ref,
                   node_ref, graph_ref):
    """Fused forward of the whole module (3 GAT layers + ELU + residual + mean pool).

    x_ref    : (N, H)        node features zero-padded to H on the lane axis
    w_ref    : (3, H, H)     stacked lin weights (layer-1 weight zero-padded on rows)
    att_ref  : (3, H, 2)     stacked attention vectors: col 0 = att_dst, col 1 = att_src
    bias_ref : (3, 1, H)     stacked output biases
    eattr_ref: (Fe, N, N)    dense edge attributes, [f, dst, src]
    mask_ref : (N, N)        1.0 where an edge (incl. self loop) exists
    c_ref    : (3, Fe) SMEM  per-layer  We @ att_edge  scalar weights
    node_ref : (N, H)        x1 + x2 + x3
    graph_ref: (1, H)        mean over nodes
    """
    mask = mask_ref[...] > 0.5
    n_fe = eattr_ref.shape[0]
    planes = [eattr_ref[f] for f in range(n_fe)]        # load each (N, N) plane once

    x = x_ref[...]
    acc = None
    for l in range(3):                                  # static layer count -> unrolled
        h = jnp.dot(x, w_ref[l], preferred_element_type=jnp.float32)         # (N, H)

        # per-node attention terms with one MXU call
        a_pair = jnp.dot(h, att_ref[l], preferred_element_type=jnp.float32)  # (N, 2)
        a_d = a_pair[:, 0:1]                            # (N, 1)   destination term
        a_s = a_pair[:, 1:2].T                          # (1, N)   source term (XLU flip)

        # per-edge attention term: sum_f eattr[f, d, s] * c[l, f]
        a_e = planes[0] * c_ref[l, 0]
        for f in range(1, n_fe):
            a_e = a_e + planes[f] * c_ref[l, f]

        logits = a_d + a_s + a_e                        # (N_dst, N_src)
        logits = jnp.where(logits > 0, logits, 0.2 * logits)   # leaky_relu(0.2)

        # masked softmax over source nodes (every row has a self loop => denom >= 1)
        m = jnp.max(jnp.where(mask, logits, -jnp.inf), axis=1, keepdims=True)
        p = jnp.where(mask, jnp.exp(logits - m), 0.0)
        denom = jnp.sum(p, axis=1, keepdims=True)
        alpha = p * pl.reciprocal(denom, approx=True)   # divide on the EUP slot

        out = jnp.dot(alpha, h, preferred_element_type=jnp.float32) + bias_ref[l]
        # ELU (alpha=1)
        x = jnp.where(out > 0, out, jnp.exp(jnp.minimum(out, 0.0)) - 1.0)
        acc = x if acc is None else acc + x

    node_ref[...] = acc
    graph_ref[...] = jnp.mean(acc, axis=0, keepdims=True)


# ----------------------------------------------------------------------------- wrappers
_VMEM = pl.BlockSpec(memory_space=pltpu.MemorySpace.VMEM)
_SMEM = pl.BlockSpec(memory_space=pltpu.MemorySpace.SMEM)


def pack_params(layer_params, node_features, hidden):
    """Stack per-layer params once (done outside the hot path)."""
    w1 = jnp.pad(layer_params[0]["W"], ((0, hidden - node_features), (0, 0)))
    w_stack = jnp.stack([w1, layer_params[1]["W"], layer_params[2]["W"]])        # (3,H,H)
    att_stack = jnp.stack([jnp.concatenate([p["att_dst"], p["att_src"]], axis=1)
                           for p in layer_params])                               # (3,H,2)
    bias_stack = jnp.stack([p["bias"] for p in layer_params])                    # (3,1,H)
    c_stack = jnp.stack([jnp.reshape(p["We"] @ p["att_edge"], (-1,))
                         for p in layer_params]).astype(jnp.float32)             # (3,Fe)
    return {"W": w_stack, "att": att_stack, "bias": bias_stack, "c": c_stack}


@jax.jit
def wsn_gnn_forward(x, eattr_planes, mask, packed):
    """Equivalent of WSN_GNN.forward(x, edge_index, edge_attr, batch=None)."""
    N, f_in = x.shape
    H = packed["W"].shape[-1]
    # zero-pad x to H lanes; exact since the matching rows of layer-1 W are zero
    x_pad = jnp.pad(x.astype(jnp.float32), ((0, 0), (0, H - f_in)))
    # TODO(synk): when N scales up, add a destination-row-tiled grid marked "parallel"
    # so v7x's two TensorCores split rows and the O(N^2) planes stay under 64 MiB VMEM.
    return pl.pallas_call(
        wsn_gnn_kernel,
        out_shape=(jax.ShapeDtypeStruct((N, H), jnp.float32),
                   jax.ShapeDtypeStruct((1, H), jnp.float32)),
        in_specs=[_VMEM, _VMEM, _VMEM, _VMEM, _VMEM, _VMEM, _SMEM],
        out_specs=(_VMEM, _VMEM),
    )(x_pad, packed["W"], packed["att"], packed["bias"], eattr_planes, mask, packed["c"])


# ----------------------------------------------------------------------------- glue
def build_dense_graph(edge_index, edge_attr, num_nodes):
    """Replicates GATConv's remove_self_loops + add_self_loops(fill_value='mean')
    and scatters the sparse edge list into dense (Fe, N, N) planes + (N, N) mask."""
    ei = np.asarray(edge_index)
    ea = np.asarray(edge_attr, dtype=np.float32)
    src, dst = ei[0], ei[1]
    keep = src != dst
    src, dst, ea = src[keep], dst[keep], ea[keep]
    fe = ea.shape[1]

    # self-loop attr = per-destination mean of incoming edge attrs (0 if none)
    loop_attr = np.zeros((num_nodes, fe), np.float32)
    counts = np.zeros((num_nodes,), np.float32)
    np.add.at(loop_attr, dst, ea)
    np.add.at(counts, dst, 1.0)
    loop_attr = loop_attr / np.maximum(counts, 1.0)[:, None]

    eattr_dense = np.zeros((num_nodes, num_nodes, fe), np.float32)   # [dst, src, f]
    mask = np.zeros((num_nodes, num_nodes), np.float32)
    eattr_dense[dst, src] = ea
    mask[dst, src] = 1.0
    idx = np.arange(num_nodes)
    eattr_dense[idx, idx] = loop_attr
    mask[idx, idx] = 1.0

    planes = np.ascontiguousarray(np.transpose(eattr_dense, (2, 0, 1)))  # (Fe, N, N)
    return jnp.asarray(planes), jnp.asarray(mask)


def glorot(key, shape):
    fan_in, fan_out = shape[0], shape[-1]
    limit = float(np.sqrt(6.0 / (fan_in + fan_out)))
    return jax.random.uniform(key, shape, jnp.float32, -limit, limit)


def init_gat_params(key, in_dim, edge_dim, hidden):
    ks = jax.random.split(key, 5)
    return {
        "W": glorot(ks[0], (in_dim, hidden)),
        "We": glorot(ks[1], (edge_dim, hidden)),
        "att_src": glorot(ks[2], (hidden, 1)),
        "att_dst": glorot(ks[3], (hidden, 1)),
        "att_edge": glorot(ks[4], (hidden, 1)),
        "bias": jnp.zeros((1, hidden), jnp.float32),
    }


# pure-JAX reference (same dense formulation) for a correctness check
def _gat_layer_ref(x, p, planes, mask):
    h = x @ p["W"]
    a_d = h @ p["att_dst"]
    a_s = (h @ p["att_src"]).T
    c = jnp.reshape(p["We"] @ p["att_edge"], (-1,))
    a_e = jnp.einsum("fds,f->ds", planes, c)
    logits = a_d + a_s + a_e
    logits = jnp.where(logits > 0, logits, 0.2 * logits)
    masked = jnp.where(mask > 0.5, logits, -1e30)
    m = masked.max(axis=1, keepdims=True)
    pm = jnp.exp(masked - m)
    alpha = pm / pm.sum(axis=1, keepdims=True)
    out = alpha @ h + p["bias"]
    return jnp.where(out > 0, out, jnp.exp(jnp.minimum(out, 0.0)) - 1.0)


def _forward_ref(x, planes, mask, layer_params):
    x1 = _gat_layer_ref(x, layer_params[0], planes, mask)
    x2 = _gat_layer_ref(x1, layer_params[1], planes, mask)
    x3 = _gat_layer_ref(x2, layer_params[2], planes, mask)
    s = x1 + x2 + x3
    return s, s.mean(axis=0, keepdims=True)


# ----------------------------------------------------------------------------- main
if __name__ == "__main__":
    N = 16            # number of sensor nodes
    NODE_F = 4        # node_features
    EDGE_F = 2        # edge_features
    HIDDEN = 32       # hidden_channels

    key = jax.random.PRNGKey(0)
    kx, ke, kp = jax.random.split(key, 3)

    # deterministic WSN-like graph: bidirectional ring + skip-3 links
    i = np.arange(N)
    src = np.concatenate([i, i, (i + 1) % N, (i + 3) % N])
    dst = np.concatenate([(i + 1) % N, (i + 3) % N, i, i])
    edge_index = np.stack([src, dst]).astype(np.int32)          # (2, E), E = 64

    x = jax.random.normal(kx, (N, NODE_F), jnp.float32)
    edge_attr = jax.random.normal(ke, (edge_index.shape[1], EDGE_F), jnp.float32)

    eattr_planes, mask = build_dense_graph(edge_index, edge_attr, N)

    pk = jax.random.split(kp, 3)
    layer_params = [
        init_gat_params(pk[0], NODE_F, EDGE_F, HIDDEN),
        init_gat_params(pk[1], HIDDEN, EDGE_F, HIDDEN),
        init_gat_params(pk[2], HIDDEN, EDGE_F, HIDDEN),
    ]
    packed = pack_params(layer_params, NODE_F, HIDDEN)

    node_emb, graph_emb = wsn_gnn_forward(x, eattr_planes, mask, packed)
    node_emb = jax.block_until_ready(node_emb)
    graph_emb = jax.block_until_ready(graph_emb)

    assert node_emb.shape == (N, HIDDEN) and graph_emb.shape == (1, HIDDEN)

    # sanity check against pure-JAX reference (kernel uses approx EUP reciprocal,
    # so allow a slightly looser tolerance than exact-divide math)
    ref_node, ref_graph = _forward_ref(x, eattr_planes, mask, layer_params)
    np.testing.assert_allclose(np.asarray(node_emb), np.asarray(ref_node), rtol=1e-2, atol=1e-2)
    np.testing.assert_allclose(np.asarray(graph_emb), np.asarray(ref_graph), rtol=1e-2, atol=1e-2)

    # TODO(synk): energy_predictor / route_scorer heads are not part of forward(); not implemented.
    print("KERNEL_OK")
</pallas_src>

<mosaic_0001>
module attributes {stable_mosaic.version = 11 : i64} {
  func.func @wsn_gnn_kernel(%arg0: memref<16x32xf32, #tpu.memory_space<vmem>>, %arg1: memref<3x32x32xf32, #tpu.memory_space<vmem>>, %arg2: memref<3x32x2xf32, #tpu.memory_space<vmem>>, %arg3: memref<3x1x32xf32, #tpu.memory_space<vmem>>, %arg4: memref<2x16x16xf32, #tpu.memory_space<vmem>>, %arg5: memref<16x16xf32, #tpu.memory_space<vmem>>, %arg6: memref<3x2xf32, #tpu.memory_space<smem>>, %arg7: memref<16x32xf32, #tpu.memory_space<vmem>>, %arg8: memref<1x32xf32, #tpu.memory_space<vmem>>) attributes {dimension_semantics = [], scalar_prefetch = 0 : i64, scratch_operands = 0 : i64, tpu.core_type = #tpu.core_type<tc>} {
    %c0 = arith.constant 0 : index
    %c0_0 = arith.constant 0 : index
    %0 = vector.load %arg5[%c0, %c0_0] : memref<16x16xf32, #tpu.memory_space<vmem>>, vector<16x16xf32>
    %cst = arith.constant 5.000000e-01 : f32
    %1 = vector.broadcast %cst : f32 to vector<16x16xf32>
    %2 = arith.cmpf ogt, %0, %1 : vector<16x16xf32>
    %c0_1 = arith.constant 0 : index
    %c0_2 = arith.constant 0 : index
    %c0_3 = arith.constant 0 : index
    %3 = vector.load %arg4[%c0_1, %c0_2, %c0_3] : memref<2x16x16xf32, #tpu.memory_space<vmem>>, vector<1x16x16xf32>
    %4 = vector.shape_cast %3 : vector<1x16x16xf32> to vector<16x16xf32>
    %c1 = arith.constant 1 : index
    %c0_4 = arith.constant 0 : index
    %c0_5 = arith.constant 0 : index
    %5 = vector.load %arg4[%c1, %c0_4, %c0_5] : memref<2x16x16xf32, #tpu.memory_space<vmem>>, vector<1x16x16xf32>
    %6 = vector.shape_cast %5 : vector<1x16x16xf32> to vector<16x16xf32>
    %c0_6 = arith.constant 0 : index
    %c0_7 = arith.constant 0 : index
    %7 = vector.load %arg0[%c0_6, %c0_7] : memref<16x32xf32, #tpu.memory_space<vmem>>, vector<16x32xf32>
    %c0_8 = arith.constant 0 : index
    %c0_9 = arith.constant 0 : index
    %c0_10 = arith.constant 0 : index
    %8 = vector.load %arg1[%c0_8, %c0_9, %c0_10] : memref<3x32x32xf32, #tpu.memory_space<vmem>>, vector<1x32x32xf32>
    %9 = vector.shape_cast %8 : vector<1x32x32xf32> to vector<32x32xf32>
    %cst_11 = arith.constant dense<0.000000e+00> : vector<16x32xf32>
    %10 = tpu.matmul %7, %9, %cst_11 {dimension_numbers = #tpu.dot_dimension_numbers<[1], [0], [0], [1], [0, 0, 1, 1], [], []>} : vector<16x32xf32>, vector<32x32xf32>, vector<16x32xf32> -> vector<16x32xf32>
    %c0_12 = arith.constant 0 : index
    %c0_13 = arith.constant 0 : index
    %c0_14 = arith.constant 0 : index
    %11 = vector.load %arg2[%c0_12, %c0_13, %c0_14] : memref<3x32x2xf32, #tpu.memory_space<vmem>>, vector<1x32x2xf32>
    %12 = vector.shape_cast %11 : vector<1x32x2xf32> to vector<32x2xf32>
    %cst_15 = arith.constant dense<0.000000e+00> : vector<16x2xf32>
    %13 = tpu.matmul %10, %12, %cst_15 {dimension_numbers = #tpu.dot_dimension_numbers<[1], [0], [0], [1], [0, 0, 1, 1], [], []>} : vector<16x32xf32>, vector<32x2xf32>, vector<16x2xf32> -> vector<16x2xf32>
    %14 = vector.extract_strided_slice %13 {offsets = [0, 0], sizes = [16, 1], strides = [1, 1]} : vector<16x2xf32> to vector<16x1xf32>
    %15 = vector.extract_strided_slice %13 {offsets = [0, 1], sizes = [16, 1], strides = [1, 1]} : vector<16x2xf32> to vector<16x1xf32>
    %16 = tpu.transpose %15, [1, 0] : vector<16x1xf32> -> vector<1x16xf32>
    %c0_16 = arith.constant 0 : index
    %c0_17 = arith.constant 0 : index
    %17 = memref.load %arg6[%c0_16, %c0_17] : memref<3x2xf32, #tpu.memory_space<smem>>
    %18 = vector.broadcast %17 : f32 to vector<16x16xf32>
    %19 = arith.mulf %4, %18 : vector<16x16xf32>
    %c0_18 = arith.constant 0 : index
    %c1_19 = arith.constant 1 : index
    %20 = memref.load %arg6[%c0_18, %c1_19] : memref<3x2xf32, #tpu.memory_space<smem>>
    %21 = vector.broadcast %20 : f32 to vector<16x16xf32>
    %22 = arith.mulf %6, %21 : vector<16x16xf32>
    %23 = arith.addf %19, %22 : vector<16x16xf32>
    %24 = vector.broadcast %14 : vector<16x1xf32> to vector<16x16xf32>
    %25 = vector.broadcast %16 : vector<1x16xf32> to vector<16x16xf32>
    %26 = arith.addf %24, %25 : vector<16x16xf32>
    %27 = arith.addf %26, %23 : vector<16x16xf32>
    %cst_20 = arith.constant 0.000000e+00 : f32
    %28 = vector.broadcast %cst_20 : f32 to vector<16x16xf32>
    %29 = arith.cmpf ogt, %27, %28 : vector<16x16xf32>
    %cst_21 = arith.constant 2.000000e-01 : f32
    %30 = vector.broadcast %cst_21 : f32 to vector<16x16xf32>
    %31 = arith.mulf %30, %27 : vector<16x16xf32>
    %32 = arith.select %29, %27, %31 : vector<16x16xi1>, vector<16x16xf32>
    %cst_22 = arith.constant 0xFF800000 : f32
    %33 = vector.broadcast %cst_22 : f32 to vector<16x16xf32>
    %34 = arith.select %2, %32, %33 : vector<16x16xi1>, vector<16x16xf32>
    %cst_23 = arith.constant dense<0xFF800000> : vector<16xf32>
    %35 = vector.multi_reduction <maximumf>, %34, %cst_23 [1] : vector<16x16xf32> to vector<16xf32>
    %36 = vector.shape_cast %35 : vector<16xf32> to vector<16x1xf32>
    %37 = vector.broadcast %36 : vector<16x1xf32> to vector<16x16xf32>
    %38 = arith.subf %32, %37 : vector<16x16xf32>
    %39 = math.exp %38 : vector<16x16xf32>
    %cst_24 = arith.constant 0.000000e+00 : f32
    %40 = vector.broadcast %cst_24 : f32 to vector<16x16xf32>
    %41 = arith.select %2, %39, %40 : vector<16x16xi1>, vector<16x16xf32>
    %cst_25 = arith.constant dense<0.000000e+00> : vector<16xf32>
    %42 = vector.multi_reduction <add>, %41, %cst_25 [1] : vector<16x16xf32> to vector<16xf32>
    %43 = vector.shape_cast %42 : vector<16xf32> to vector<16x1xf32>
    %44 = tpu.reciprocal %43 {approx = true} : vector<16x1xf32> -> vector<16x1xf32>
    %45 = vector.broadcast %44 : vector<16x1xf32> to vector<16x16xf32>
    %46 = arith.mulf %41, %45 : vector<16x16xf32>
    %cst_26 = arith.constant dense<0.000000e+00> : vector<16x32xf32>
    %47 = tpu.matmul %46, %10, %cst_26 {dimension_numbers = #tpu.dot_dimension_numbers<[1], [0], [0], [1], [0, 0, 1, 1], [], []>} : vector<16x16xf32>, vector<16x32xf32>, vector<16x32xf32> -> vector<16x32xf32>
    %c0_27 = arith.constant 0 : index
    %c0_28 = arith.constant 0 : index
    %c0_29 = arith.constant 0 : index
    %48 = vector.load %arg3[%c0_27, %c0_28, %c0_29] : memref<3x1x32xf32, #tpu.memory_space<vmem>>, vector<1x1x32xf32>
    %49 = vector.shape_cast %48 : vector<1x1x32xf32> to vector<1x32xf32>
    %50 = vector.broadcast %49 : vector<1x32xf32> to vector<16x32xf32>
    %51 = arith.addf %47, %50 : vector<16x32xf32>
    %cst_30 = arith.constant 0.000000e+00 : f32
    %52 = vector.broadcast %cst_30 : f32 to vector<16x32xf32>
    %53 = arith.cmpf ogt, %51, %52 : vector<16x32xf32>
    %cst_31 = arith.constant 0.000000e+00 : f32
    %54 = vector.broadcast %cst_31 : f32 to vector<16x32xf32>
    %55 = arith.minimumf %51, %54 : vector<16x32xf32>
    %56 = math.exp %55 : vector<16x32xf32>
    %cst_32 = arith.constant 1.000000e+00 : f32
    %57 = vector.broadcast %cst_32 : f32 to vector<16x32xf32>
    %58 = arith.subf %56, %57 : vector<16x32xf32>
    %59 = arith.select %53, %51, %58 : vector<16x32xi1>, vector<16x32xf32>
    %c1_33 = arith.constant 1 : index
    %c0_34 = arith.constant 0 : index
    %c0_35 = arith.constant 0 : index
    %60 = vector.load %arg1[%c1_33, %c0_34, %c0_35] : memref<3x32x32xf32, #tpu.memory_space<vmem>>, vector<1x32x32xf32>
    %61 = vector.shape_cast %60 : vector<1x32x32xf32> to vector<32x32xf32>
    %cst_36 = arith.constant dense<0.000000e+00> : vector<16x32xf32>
    %62 = tpu.matmul %59, %61, %cst_36 {dimension_numbers = #tpu.dot_dimension_numbers<[1], [0], [0], [1], [0, 0, 1, 1], [], []>} : vector<16x32xf32>, vector<32x32xf32>, vector<16x32xf32> -> vector<16x32xf32>
    %c1_37 = arith.constant 1 : index
    %c0_38 = arith.constant 0 : index
    %c0_39 = arith.constant 0 : index
    %63 = vector.load %arg2[%c1_37, %c0_38, %c0_39] : memref<3x32x2xf32, #tpu.memory_space<vmem>>, vector<1x32x2xf32>
    %64 = vector.shape_cast %63 : vector<1x32x2xf32> to vector<32x2xf32>
    %cst_40 = arith.constant dense<0.000000e+00> : vector<16x2xf32>
    %65 = tpu.matmul %62, %64, %cst_40 {dimension_numbers = #tpu.dot_dimension_numbers<[1], [0], [0], [1], [0, 0, 1, 1], [], []>} : vector<16x32xf32>, vector<32x2xf32>, vector<16x2xf32> -> vector<16x2xf32>
    %66 = vector.extract_strided_slice %65 {offsets = [0, 0], sizes = [16, 1], strides = [1, 1]} : vector<16x2xf32> to vector<16x1xf32>
    %67 = vector.extract_strided_slice %65 {offsets = [0, 1], sizes = [16, 1], strides = [1, 1]} : vector<16x2xf32> to vector<16x1xf32>
    %68 = tpu.transpose %67, [1, 0] : vector<16x1xf32> -> vector<1x16xf32>
    %c1_41 = arith.constant 1 : index
    %c0_42 = arith.constant 0 : index
    %69 = memref.load %arg6[%c1_41, %c0_42] : memref<3x2xf32, #tpu.memory_space<smem>>
    %70 = vector.broadcast %69 : f32 to vector<16x16xf32>
    %71 = arith.mulf %4, %70 : vector<16x16xf32>
    %c1_43 = arith.constant 1 : index
    %c1_44 = arith.constant 1 : index
    %72 = memref.load %arg6[%c1_43, %c1_44] : memref<3x2xf32, #tpu.memory_space<smem>>
    %73 = vector.broadcast %72 : f32 to vector<16x16xf32>
    %74 = arith.mulf %6, %73 : vector<16x16xf32>
    %75 = arith.addf %71, %74 : vector<16x16xf32>
    %76 = vector.broadcast %66 : vector<16x1xf32> to vector<16x16xf32>
    %77 = vector.broadcast %68 : vector<1x16xf32> to vector<16x16xf32>
    %78 = arith.addf %76, %77 : vector<16x16xf32>
    %79 = arith.addf %78, %75 : vector<16x16xf32>
    %cst_45 = arith.constant 0.000000e+00 : f32
    %80 = vector.broadcast %cst_45 : f32 to vector<16x16xf32>
    %81 = arith.cmpf ogt, %79, %80 : vector<16x16xf32>
    %cst_46 = arith.constant 2.000000e-01 : f32
    %82 = vector.broadcast %cst_46 : f32 to vector<16x16xf32>
    %83 = arith.mulf %82, %79 : vector<16x16xf32>
    %84 = arith.select %81, %79, %83 : vector<16x16xi1>, vector<16x16xf32>
    %cst_47 = arith.constant 0xFF800000 : f32
    %85 = vector.broadcast %cst_47 : f32 to vector<16x16xf32>
    %86 = arith.select %2, %84, %85 : vector<16x16xi1>, vector<16x16xf32>
    %cst_48 = arith.constant dense<0xFF800000> : vector<16xf32>
    %87 = vector.multi_reduction <maximumf>, %86, %cst_48 [1] : vector<16x16xf32> to vector<16xf32>
    %88 = vector.shape_cast %87 : vector<16xf32> to vector<16x1xf32>
    %89 = vector.broadcast %88 : vector<16x1xf32> to vector<16x16xf32>
    %90 = arith.subf %84, %89 : vector<16x16xf32>
    %91 = math.exp %90 : vector<16x16xf32>
    %cst_49 = arith.constant 0.000000e+00 : f32
    %92 = vector.broadcast %cst_49 : f32 to vector<16x16xf32>
    %93 = arith.select %2, %91, %92 : vector<16x16xi1>, vector<16x16xf32>
    %cst_50 = arith.constant dense<0.000000e+00> : vector<16xf32>
    %94 = vector.multi_reduction <add>, %93, %cst_50 [1] : vector<16x16xf32> to vector<16xf32>
    %95 = vector.shape_cast %94 : vector<16xf32> to vector<16x1xf32>
    %96 = tpu.reciprocal %95 {approx = true} : vector<16x1xf32> -> vector<16x1xf32>
    %97 = vector.broadcast %96 : vector<16x1xf32> to vector<16x16xf32>
    %98 = arith.mulf %93, %97 : vector<16x16xf32>
    %cst_51 = arith.constant dense<0.000000e+00> : vector<16x32xf32>
    %99 = tpu.matmul %98, %62, %cst_51 {dimension_numbers = #tpu.dot_dimension_numbers<[1], [0], [0], [1], [0, 0, 1, 1], [], []>} : vector<16x16xf32>, vector<16x32xf32>, vector<16x32xf32> -> vector<16x32xf32>
    %c1_52 = arith.constant 1 : index
    %c0_53 = arith.constant 0 : index
    %c0_54 = arith.constant 0 : index
    %100 = vector.load %arg3[%c1_52, %c0_53, %c0_54] : memref<3x1x32xf32, #tpu.memory_space<vmem>>, vector<1x1x32xf32>
    %101 = vector.shape_cast %100 : vector<1x1x32xf32> to vector<1x32xf32>
    %102 = vector.broadcast %101 : vector<1x32xf32> to vector<16x32xf32>
    %103 = arith.addf %99, %102 : vector<16x32xf32>
    %cst_55 = arith.constant 0.000000e+00 : f32
    %104 = vector.broadcast %cst_55 : f32 to vector<16x32xf32>
    %105 = arith.cmpf ogt, %103, %104 : vector<16x32xf32>
    %cst_56 = arith.constant 0.000000e+00 : f32
    %106 = vector.broadcast %cst_56 : f32 to vector<16x32xf32>
    %107 = arith.minimumf %103, %106 : vector<16x32xf32>
    %108 = math.exp %107 : vector<16x32xf32>
    %cst_57 = arith.constant 1.000000e+00 : f32
    %109 = vector.broadcast %cst_57 : f32 to vector<16x32xf32>
    %110 = arith.subf %108, %109 : vector<16x32xf32>
    %111 = arith.select %105, %103, %110 : vector<16x32xi1>, vector<16x32xf32>
    %112 = arith.addf %59, %111 : vector<16x32xf32>
    %c2 = arith.constant 2 : index
    %c0_58 = arith.constant 0 : index
    %c0_59 = arith.constant 0 : index
    %113 = vector.load %arg1[%c2, %c0_58, %c0_59] : memref<3x32x32xf32, #tpu.memory_space<vmem>>, vector<1x32x32xf32>
    %114 = vector.shape_cast %113 : vector<1x32x32xf32> to vector<32x32xf32>
    %cst_60 = arith.constant dense<0.000000e+00> : vector<16x32xf32>
    %115 = tpu.matmul %111, %114, %cst_60 {dimension_numbers = #tpu.dot_dimension_numbers<[1], [0], [0], [1], [0, 0, 1, 1], [], []>} : vector<16x32xf32>, vector<32x32xf32>, vector<16x32xf32> -> vector<16x32xf32>
    %c2_61 = arith.constant 2 : index
    %c0_62 = arith.constant 0 : index
    %c0_63 = arith.constant 0 : index
    %116 = vector.load %arg2[%c2_61, %c0_62, %c0_63] : memref<3x32x2xf32, #tpu.memory_space<vmem>>, vector<1x32x2xf32>
    %117 = vector.shape_cast %116 : vector<1x32x2xf32> to vector<32x2xf32>
    %cst_64 = arith.constant dense<0.000000e+00> : vector<16x2xf32>
    %118 = tpu.matmul %115, %117, %cst_64 {dimension_numbers = #tpu.dot_dimension_numbers<[1], [0], [0], [1], [0, 0, 1, 1], [], []>} : vector<16x32xf32>, vector<32x2xf32>, vector<16x2xf32> -> vector<16x2xf32>
    %119 = vector.extract_strided_slice %118 {offsets = [0, 0], sizes = [16, 1], strides = [1, 1]} : vector<16x2xf32> to vector<16x1xf32>
    %120 = vector.extract_strided_slice %118 {offsets = [0, 1], sizes = [16, 1], strides = [1, 1]} : vector<16x2xf32> to vector<16x1xf32>
    %121 = tpu.transpose %120, [1, 0] : vector<16x1xf32> -> vector<1x16xf32>
    %c2_65 = arith.constant 2 : index
    %c0_66 = arith.constant 0 : index
    %122 = memref.load %arg6[%c2_65, %c0_66] : memref<3x2xf32, #tpu.memory_space<smem>>
    %123 = vector.broadcast %122 : f32 to vector<16x16xf32>
    %124 = arith.mulf %4, %123 : vector<16x16xf32>
    %c2_67 = arith.constant 2 : index
    %c1_68 = arith.constant 1 : index
    %125 = memref.load %arg6[%c2_67, %c1_68] : memref<3x2xf32, #tpu.memory_space<smem>>
    %126 = vector.broadcast %125 : f32 to vector<16x16xf32>
    %127 = arith.mulf %6, %126 : vector<16x16xf32>
    %128 = arith.addf %124, %127 : vector<16x16xf32>
    %129 = vector.broadcast %119 : vector<16x1xf32> to vector<16x16xf32>
    %130 = vector.broadcast %121 : vector<1x16xf32> to vector<16x16xf32>
    %131 = arith.addf %129, %130 : vector<16x16xf32>
    %132 = arith.addf %131, %128 : vector<16x16xf32>
    %cst_69 = arith.constant 0.000000e+00 : f32
    %133 = vector.broadcast %cst_69 : f32 to vector<16x16xf32>
    %134 = arith.cmpf ogt, %132, %133 : vector<16x16xf32>
    %cst_70 = arith.constant 2.000000e-01 : f32
    %135 = vector.broadcast %cst_70 : f32 to vector<16x16xf32>
    %136 = arith.mulf %135, %132 : vector<16x16xf32>
    %137 = arith.select %134, %132, %136 : vector<16x16xi1>, vector<16x16xf32>
    %cst_71 = arith.constant 0xFF800000 : f32
    %138 = vector.broadcast %cst_71 : f32 to vector<16x16xf32>
    %139 = arith.select %2, %137, %138 : vector<16x16xi1>, vector<16x16xf32>
    %cst_72 = arith.constant dense<0xFF800000> : vector<16xf32>
    %140 = vector.multi_reduction <maximumf>, %139, %cst_72 [1] : vector<16x16xf32> to vector<16xf32>
    %141 = vector.shape_cast %140 : vector<16xf32> to vector<16x1xf32>
    %142 = vector.broadcast %141 : vector<16x1xf32> to vector<16x16xf32>
    %143 = arith.subf %137, %142 : vector<16x16xf32>
    %144 = math.exp %143 : vector<16x16xf32>
    %cst_73 = arith.constant 0.000000e+00 : f32
    %145 = vector.broadcast %cst_73 : f32 to vector<16x16xf32>
    %146 = arith.select %2, %144, %145 : vector<16x16xi1>, vector<16x16xf32>
    %cst_74 = arith.constant dense<0.000000e+00> : vector<16xf32>
    %147 = vector.multi_reduction <add>, %146, %cst_74 [1] : vector<16x16xf32> to vector<16xf32>
    %148 = vector.shape_cast %147 : vector<16xf32> to vector<16x1xf32>
    %149 = tpu.reciprocal %148 {approx = true} : vector<16x1xf32> -> vector<16x1xf32>
    %150 = vector.broadcast %149 : vector<16x1xf32> to vector<16x16xf32>
    %151 = arith.mulf %146, %150 : vector<16x16xf32>
    %cst_75 = arith.constant dense<0.000000e+00> : vector<16x32xf32>
    %152 = tpu.matmul %151, %115, %cst_75 {dimension_numbers = #tpu.dot_dimension_numbers<[1], [0], [0], [1], [0, 0, 1, 1], [], []>} : vector<16x16xf32>, vector<16x32xf32>, vector<16x32xf32> -> vector<16x32xf32>
    %c2_76 = arith.constant 2 : index
    %c0_77 = arith.constant 0 : index
    %c0_78 = arith.constant 0 : index
    %153 = vector.load %arg3[%c2_76, %c0_77, %c0_78] : memref<3x1x32xf32, #tpu.memory_space<vmem>>, vector<1x1x32xf32>
    %154 = vector.shape_cast %153 : vector<1x1x32xf32> to vector<1x32xf32>
    %155 = vector.broadcast %154 : vector<1x32xf32> to vector<16x32xf32>
    %156 = arith.addf %152, %155 : vector<16x32xf32>
    %cst_79 = arith.constant 0.000000e+00 : f32
    %157 = vector.broadcast %cst_79 : f32 to vector<16x32xf32>
    %158 = arith.cmpf ogt, %156, %157 : vector<16x32xf32>
    %cst_80 = arith.constant 0.000000e+00 : f32
    %159 = vector.broadcast %cst_80 : f32 to vector<16x32xf32>
    %160 = arith.minimumf %156, %159 : vector<16x32xf32>
    %161 = math.exp %160 : vector<16x32xf32>
    %cst_81 = arith.constant 1.000000e+00 : f32
    %162 = vector.broadcast %cst_81 : f32 to vector<16x32xf32>
    %163 = arith.subf %161, %162 : vector<16x32xf32>
    %164 = arith.select %158, %156, %163 : vector<16x32xi1>, vector<16x32xf32>
    %165 = arith.addf %112, %164 : vector<16x32xf32>
    %c0_82 = arith.constant 0 : index
    %c0_83 = arith.constant 0 : index
    %166 = vector.load %arg7[%c0_82, %c0_83] : memref<16x32xf32, #tpu.memory_space<vmem>>, vector<16x32xf32>
    tpu.vector_store %arg7[%c0_82, %c0_83], %165 {strides = array<i32>} : memref<16x32xf32, #tpu.memory_space<vmem>>, vector<16x32xf32>,
    %cst_84 = arith.constant dense<0.000000e+00> : vector<32xf32>
    %167 = vector.multi_reduction <add>, %165, %cst_84 [0] : vector<16x32xf32> to vector<32xf32>
    %168 = vector.shape_cast %167 : vector<32xf32> to vector<1x32xf32>
    %cst_85 = arith.constant 1.600000e+01 : f32
    %169 = vector.broadcast %cst_85 : f32 to vector<1x32xf32>
    %170 = arith.divf %168, %169 : vector<1x32xf32>
    %c0_86 = arith.constant 0 : index
    %c0_87 = arith.constant 0 : index
    %171 = vector.load %arg8[%c0_86, %c0_87] : memref<1x32xf32, #tpu.memory_space<vmem>>, vector<1x32xf32>
    tpu.vector_store %arg8[%c0_86, %c0_87], %170 {strides = array<i32>} : memref<1x32xf32, #tpu.memory_space<vmem>>, vector<1x32xf32>,
    return
  }
}

</mosaic_0001>

<bundles_post_ra>
// kernel: wsn_gnn_forward.1
= control target key start
LH: loop header
LB: loop body
LE: loop exit
PB: predicated region body
PF: predicated region fallthrough
CT: control target
= control target key end

     0   :  { %14 = vsyncpa [#allocation4], 0  ;;  %s1866_s0 = inlined_call_operand.vmem [shape: f32[16,32], index: 0, kind: input, shape index: {}]   ;;  %s1867_s1 = inlined_call_operand.vmem [shape: f32[3,32,32], index: 1, kind: input, shape index: {}]   ;;  %s1868_s2 = inlined_call_operand.vmem [shape: f32[3,32,2], index: 2, kind: input, shape index: {}]   ;;  %s1869_s3 = inlined_call_operand.vmem [shape: f32[3,1,32], index: 3, kind: input, shape index: {}]   ;;  %s1870_s4 = inlined_call_operand.vmem [shape: f32[2,16,16], index: 4, kind: input, shape index: {}]   ;;  %s1871_s5 = inlined_call_operand.vmem [shape: f32[16,16], index: 5, kind: input, shape index: {}]   ;;  %s1872_s6 = inlined_call_operand.vmem [shape: f32[3,2], index: 6, kind: input, shape index: {}]   ;;  %s1873_s7 = inlined_call_operand.hbm [shape: f32[16,32], index: 7, kind: output, shape index: {0}]   ;;  %s1874_s8 = inlined_call_operand.hbm [shape: f32[1,32], index: 8, kind: output, shape index: {1}]  }
   0x1   :  { %15 = vsyncpa [#allocation3], 0 }
   0x2   :  { %16 = vsyncpa [#allocation7], 0  ;;  %s35_s29 = sshll.u32 %s1872_s6, 4  ;;  %s36_s29 = int_to_ptr.vmem [resolvable:$true] %s35_s29 }
   0x3   :  { %s1509_s30 = scalar_lea.vmem %s36_s29, 64  ;;  %p1514_p1 = scmp.lt.s32.totalorder %s36_s29, %s36_s29 }
   0x4   :  { %p1510_p0 = scmp.ne.s32.totalorder %s36_s29, %s1509_s30  ;;  %p1515_p2 = scmp.lt.s32.totalorder %s1509_s30, %s1509_s30 }
   0x6   :  { %p1516_p3 = por %p1515_p2, %p1514_p1 }
   0x8   :  { %p1517_p4 = pnand %p1516_p3, %p1510_p0 }
   0xa   :  { %1520 = shalt.err (!%p1517_p4)
}
   0xb   :  { %s1571_s9 = smov [#allocation2]  }
   0xc   :  { %38 = dma.vmem_to_smem %s36_s29, 64, %s1571_s9, [#allocation4]  }
   0xd   :  { %1565 = dma.done.wait [#allocation4], 64  }
   0xe   :  { %1566 = vsyncadd [#allocation4], 4294967232 }
   0xf   :  { %42 = sfence }
  0x10   :  { %v54_v0 = vld [vmem:[%s1867_s1] sm:$0xff]  ;;  %v55_v1 = vld [vmem:[%s1867_s1 + $0x8] sm:$0xff]  ;;  %v56_v2 = vld [vmem:[%s1867_s1 + $0x10] sm:$0xff]  ;;  %vm58_vm0 = vcmask 261120   ;;  %v1572_v17 = vmov 0   ;;  %s1573_s29 = smov 127   ;;  %v283_v22 = vlaneseq }
  0x11   :  { %v1403_v3 = vpack.c.bf16 %v55_v1, %v54_v0  ;;  %v57_v4 = vld [vmem:[%s1867_s1 + $0x18] sm:$0xff]  ;;  %v52_v5 = vld [vmem:[%s1866_s0] sm:$0xff]  ;;  %v141_v8 = vld [vmem:[%s1868_s2 + $0x8] sm:$0xff]  ;;  %1471 = vset.pattern.permute.xlu1 %v1572_v17  ;;  %s1222_s30 = sld [smem:[#allocation2 + $0x1]]  ;;  %vm299_vm5 = vcmask 130048   ;;  %s1240_s6 = sld [smem:[#allocation2 + $0x80]] }
  0x12   :  { %v1407_v6 = vpack.c.bf16 %v57_v4, %v56_v2  ;;  %1324 = vmatprep.mubr.msk.f32.mxu0 %vm58_vm0, %v52_v5  ;;  %v140_v7 = vld [vmem:[%s1868_s2] sm:$0xff]  ;;  %v142_v9 = vld [vmem:[%s1868_s2 + $0x10] sm:$0xff]  ;;  %v143_v11 = vld [vmem:[%s1868_s2 + $0x18] sm:$0xff]  ;;  %v284_v23 = vshrl.u32 %v283_v22, 7  ;;  %s1241_s14 = sld [smem:[#allocation2 + $0x81]]  ;;  %s1574_s10 = smov [#allocation5]  }
  0x13   :  { %1404 = vmatprep.subr.bf16.mxu0 %v1403_v3  ;;  %v1411_v10 = vpack.c.bf16 %v141_v8, %v140_v7  ;;  %v1415_v12 = vpack.c.bf16 %v143_v11, %v142_v9  ;;  %v53_v13 = vld [vmem:[%s1866_s0 + $0x8] sm:$0xff]  ;;  %s265_s0 = sld [smem:[#allocation2]]  ;;  %v1665_v25 = vld [vmem:[%s1870_s4] sm:$0xff]  ;;  %v1675_v28 = vld [vmem:[%s1870_s4 + $0x10] sm:$0xff] }
  0x14   :  { %1406 = vmatpush3.bf16.msra.mxu0 %v1403_v3  ;;  %v1670_v27 = vld [vmem:[%s1870_s4 + $0x8] sm:$0xff]  ;;  %v1680_v29 = vld [vmem:[%s1870_s4 + $0x18] sm:$0xff]  ;;  %v1682_v31 = vsub.s32 0, %v284_v23  ;;  %v1697_v44 = vld [vmem:[%s1871_s5] sm:$0xff] }
  0x15   :  { %1408 = vmatprep.subr.bf16.mxu0 %v1407_v6  ;;  %1412 = vmatprep.subr.bf16.mxu1 %v1411_v10  ;;  %v1692_v43 = vld [vmem:[%s1871_s5 + $0x8] sm:$0xff]  ;;  %vm45_vm2 = vcmp.gt.f32.partialorder %v1697_v44, 0.5  ;;  %v1228_v9 = vld [vmem:[%s1867_s1 + $0x20] sm:$0xff] }
  0x16   :  { %1414 = vmatpush3.bf16.msra.mxu1 %v1411_v10  ;;  %vm46_vm1 = vcmp.gt.f32.partialorder %v1692_v43, 0.5  ;;  %v1229_v10 = vld [vmem:[%s1867_s1 + $0x28] sm:$0xff]  ;;  %v1263_v43 = vld [vmem:[%s1869_s3 + $0x2] ss:$0 sm:$0xff] }
  0x17   :  { %1416 = vmatprep.subr.bf16.mxu1 %v1415_v12  ;;  %v270_v26 = vstv %s1222_s30  ;;  %v1423_v11 = vpack.c.bf16 %v1229_v10, %v1228_v9  ;;  %s1261_s30 = sld [smem:[#allocation2 + $0x101]] }
  0x18   :  { %1410 = vmatpush3.bf16.msra.mxu0 %v1407_v6  ;;  %v271_v34 = vmul.f32 %v1675_v28, %v270_v26  ;;  %v272_v35 = vmul.f32 %v1680_v29, %v270_v26 }
  0x19   :  { %v266_v24 = vstv %s265_s0 }
  0x1a   :  { %1418 = vmatpush3.bf16.msra.mxu1 %v1415_v12  ;;  %v267_v32 = vmul.f32 %v266_v24, %v1665_v25  ;;  %v268_v33 = vmul.f32 %v266_v24, %v1670_v27  ;;  %v1230_v12 = vld [vmem:[%s1867_s1 + $0x30] sm:$0xff] }
  0x1b   :  { %1325 = vmatmul.mubr.msk.f32.vlgmr.msra.gmra.mrb[0].mxu0 %vm58_vm0, %v53_v13  ;;  %1424 = vmatprep.subr.bf16.mxu1 %v1423_v11  ;;  %v1231_v13 = vld [vmem:[%s1867_s1 + $0x38] sm:$0xff] }
  0x1c   :  { %v273_v37 = vadd.f32 %v271_v34, %v267_v32  ;;  %v274_v38 = vadd.f32 %v272_v35, %v268_v33 }
  0xee   :  { %v1326_v14 = vpop.f32.mrb[0].mxu0 }
  0xef   :  { %v131_v15 = vpop.f32.mrb[1].mxu0 }
  0xf0   :  { %v1419_v16 = vpack.c.bf16 %v1326_v14, %v131_v15  ;;  %1335 = vmatprep.mubr.msk.f32.mxu1 %vm58_vm0, %v131_v15  ;;  %v1234_v15 = vld [vmem:[%s1868_s2 + $0x20] sm:$0xff] }
  0xf1   :  { %1336 = vmatmul.mubr.msk.f32.vlgmr.msra.gmra.mrb[0].mxu1 %vm58_vm0, %v1326_v14  ;;  %v1427_v14 = vpack.c.bf16 %v1231_v13, %v1230_v12 }
  0xf2   :  { %1420 = vmatprep.subr.bf16.mxu0 %v1419_v16  ;;  %1426 = vmatpush3.bf16.msra.mxu1 %v1423_v11 }
  0xf3   :  { %1422 = vmatpush3.bf16.msra.mxu0 %v1419_v16  ;;  %1428 = vmatprep.subr.bf16.mxu1 %v1427_v14  ;;  %v1235_v16 = vld [vmem:[%s1868_s2 + $0x28] sm:$0xff] }
  0xf6   :  { %1430 = vmatpush3.bf16.msra.mxu1 %v1427_v14 }
 0x1c4   :  { %v1337_v18 = vpop.f32.mrb[0].mxu1 }
 0x1c5   :  { %v216_v19 = vpop.f32.mrb[1].mxu1 }
 0x1c6   :  { %276 = vperm.xlu1 %1471, %v216_v19   ;;  %227 = vrot.lane.b32.xlu0 %v216_v19, %s1573_s29  ;;  %v1237_v19 = vld [vmem:[%s1868_s2 + $0x38] sm:$0xff] }
 0x1ca   :  { %280 = vperm.xlu1 %1471, %v1337_v18   ;;  %229 = vrot.lane.b32.xlu0 %v1337_v18, %s1573_s29  ;;  %v1431_v18 = vpack.c.bf16 %v1235_v16, %v1234_v15 }
 0x1cc   :  { %1432 = vmatprep.subr.bf16.mxu0 %v1431_v18 }
 0x238   :  { %v228_v20 = vpop.permute.xlu0 %227 }
 0x239   :  { %233 = vxpose.xlu0.b32.start [1/2] (short) (narrow) %v228_v20, 8 }
 0x23c   :  { %v230_v21 = vpop.permute.xlu0 %229 }
 0x23d   :  { %234 = vxpose.xlu0.b32.end [2/2] (short) (narrow) %v230_v21, 8  ;;  %v1223_v21 = vld [vmem:[%s1869_s3] ss:$0 sm:$0xff] }
 0x245   :  { %v277_v30 = vpop.permute.xlu1 %276 }
 0x249   :  { %v281_v40 = vpop.permute.xlu1 %280 }
 0x266   :  { %1472 = vset.pattern.permute.xlu0 %v1572_v17  ;;  %v1236_v17 = vld [vmem:[%s1868_s2 + $0x30] sm:$0xff] }
 0x267   :  { %v1435_v20 = vpack.c.bf16 %v1237_v19, %v1236_v17 }
 0x2b9   :  { %v249_v36 = vpop.trf.xlu0 }
 0x2ba   :  { %v286_v39 = vrot.slane %v249_v36, %v1682_v31 }
 0x2bc   :  { %v287_v41 = vadd.f32 %v286_v39, %v277_v30  ;;  %v288_v42 = vadd.f32 %v286_v39, %v281_v40 }
 0x2be   :  { %v289_v45 = vadd.f32 %v287_v41, %v273_v37  ;;  %v290_v46 = vadd.f32 %v288_v42, %v274_v38 }
 0x2c0   :  { %vm292_vm3 = vcmp.gt.f32.partialorder %v290_v46, 0.0  ;;  %v294_v47 = vmul.f32 0.2, %v290_v46  ;;  %vm291_vm4 = vcmp.gt.f32.partialorder %v289_v45, 0.0  ;;  %v293_v48 = vmul.f32 0.2, %v289_v45 }
 0x2c2   :  { %v296_v49 = vsel %vm292_vm3, %v290_v46, %v294_v47  ;;  %v295_v50 = vsel %vm291_vm4, %v289_v45, %v293_v48 }
 0x2c3   :  { %v298_v51 = vsel %vm46_vm1, %v296_v49, -inf  ;;  %v297_v52 = vsel %vm45_vm2, %v295_v50, -inf }
 0x2c4   :  { %v303_v53 = vsel %vm299_vm5, %v298_v51, -inf  ;;  %v300_v54 = vsel %vm299_vm5, %v297_v52, -inf  ;;  %v637_v51 = vstv %s1240_s6  ;;  %v641_v52 = vstv %s1241_s14 }
 0x2c5   :  { %304 = vmax.xlane.f32.xlu0 %v303_v53  ;;  %301 = vmax.xlane.f32.xlu1 %v300_v54  ;;  %v638_v54 = vmul.f32 %v637_v51, %v1665_v25 }
 0x352   :  { %v305_v55 = vpop.xlane.xlu0 %304  ;;  %v302_v56 = vpop.xlane.xlu1 %301 }
 0x353   :  { %v307_v57 = vsub.f32 %v296_v49, %v305_v55  ;;  %v306_v58 = vsub.f32 %v295_v50, %v302_v56  ;;  %v639_v55 = vmul.f32 %v637_v51, %v1670_v27  ;;  %v642_v56 = vmul.f32 %v1675_v28, %v641_v52 }
 0x355   :  { %v310_v59 = vmul.f32 1.442695, %v307_v57  ;;  %v308_v60 = vmul.f32 1.442695, %v306_v58  ;;  %v643_v57 = vmul.f32 %v1680_v29, %v641_v52 }
 0x357   :  { %1473 = vpow2.f32 %v310_v59  ;;  %v644_v59 = vadd.f32 %v642_v56, %v638_v54 }
 0x358   :  { %1475 = vpow2.f32 %v308_v60  ;;  %v645_v60 = vadd.f32 %v643_v57, %v639_v55 }
 0x361   :  { %v1474_v61 = vpop.eup %1473 }
 0x362   :  { %v1476_v62 = vpop.eup %1475  ;;  %v313_v1 = vsel %vm46_vm1, %v1474_v61, 0.0 }
 0x363   :  { %v312_v63 = vsel %vm45_vm2, %v1476_v62, 0.0  ;;  %v317_v2 = vsel %vm299_vm5, %v313_v1, 0.0 }
 0x364   :  { %v314_v0 = vsel %vm299_vm5, %v312_v63, 0.0 }
 0x365   :  { %315 = vadd.xlane.f32.xlu1 %v314_v0 }
 0x369   :  { %318 = vadd.xlane.f32.xlu1 %v317_v2 }
 0x3f2   :  { %v316_v3 = vpop.xlane.xlu1 %315 }
 0x3f3   :  { %1477 = vrcp.f32 %v316_v3 }
 0x3f6   :  { %v319_v4 = vpop.xlane.xlu1 %318 }
 0x3f7   :  { %1479 = vrcp.f32 %v319_v4 }
 0x3fd   :  { %v1478_v5 = vpop.eup %1477 }
 0x3fe   :  { %v322_v6 = vmul.f32 %v1478_v5, %v312_v63 }
 0x400   :  { %1342 = vmatprep.mubr.msk.f32.mxu0 %vm299_vm5, %v322_v6 }
 0x401   :  { %v1480_v7 = vpop.eup %1479 }
 0x402   :  { %v323_v8 = vmul.f32 %v1480_v7, %v313_v1 }
 0x404   :  { %1343 = vmatmul.mubr.msk.f32.vlgmr.msra.gmra.mrb[2].mxu0 %vm299_vm5, %v323_v8 }
 0x405   :  { %1434 = vmatpush3.bf16.msra.mxu0 %v1431_v18 }
 0x406   :  { %1436 = vmatprep.subr.bf16.mxu0 %v1435_v20 }
 0x409   :  { %1438 = vmatpush3.bf16.msra.mxu0 %v1435_v20 }
 0x4d7   :  { %v1344_v22 = vpop.f32.mrb[2].mxu0 }
 0x4d8   :  { %v409_v23 = vadd.f32 %v1344_v22, %v1223_v21  ;;  %v403_v24 = vpop.f32.mrb[3].mxu0 }
 0x4d9   :  { %v404_v26 = vadd.f32 %v1223_v21, %v403_v24 }
 0x4da   :  { %v415_v30 = vmin.f32 %v409_v23, 0.0  ;;  %vm413_vm7 = vcmp.gt.f32.partialorder %v409_v23, 0.0 }
 0x4db   :  { %v414_v32 = vmin.f32 %v404_v26, 0.0  ;;  %vm412_vm6 = vcmp.gt.f32.partialorder %v404_v26, 0.0 }
 0x4dc   :  { %v418_v33 = vmul.f32 1.442695, %v415_v30 }
 0x4dd   :  { %v416_v34 = vmul.f32 1.442695, %v414_v32 }
 0x4de   :  { %1481 = vpow2.f32 %v418_v33  ;;  %v1248_v33 = vld [vmem:[%s1867_s1 + $0x40] sm:$0xff] }
 0x4df   :  { %1483 = vpow2.f32 %v416_v34  ;;  %v1249_v34 = vld [vmem:[%s1867_s1 + $0x48] sm:$0xff] }
 0x4e8   :  { %v1482_v35 = vpop.eup %1481 }
 0x4e9   :  { %v1484_v36 = vpop.eup %1483  ;;  %v1227_v37 = vadd.f32 -1.0, %v1482_v35  ;;  %v1443_v35 = vpack.c.bf16 %v1249_v34, %v1248_v33 }
 0x4ea   :  { %v1226_v38 = vadd.f32 -1.0, %v1484_v36  ;;  %v1250_v36 = vld [vmem:[%s1867_s1 + $0x50] sm:$0xff] }
 0x4eb   :  { %v1744_v40 = vsel %vm413_vm7, %v409_v23, %v1227_v37  ;;  %1444 = vmatprep.subr.bf16.mxu0 %v1443_v35  ;;  %v1251_v37 = vld [vmem:[%s1867_s1 + $0x58] sm:$0xff] }
 0x4ec   :  { %v1742_v39 = vsel %vm412_vm6, %v404_v26, %v1226_v38  ;;  %v1447_v38 = vpack.c.bf16 %v1251_v37, %v1250_v36 }
 0x4ed   :  { %1353 = vmatprep.mubr.msk.f32.mxu1 %vm58_vm0, %v1742_v39 }
 0x4ee   :  { %1354 = vmatmul.mubr.msk.f32.vlgmr.msra.gmra.mrb[2].mxu1 %vm58_vm0, %v1744_v40 }
 0x5c1   :  { %v1355_v41 = vpop.f32.mrb[2].mxu1 }
 0x5c2   :  { %v501_v42 = vpop.f32.mrb[3].mxu1 }
 0x5c3   :  { %v1439_v45 = vpack.c.bf16 %v1355_v41, %v501_v42  ;;  %1364 = vmatprep.mubr.msk.f32.mxu0 %vm58_vm0, %v501_v42  ;;  %v1255_v42 = vld [vmem:[%s1868_s2 + $0x48] sm:$0xff] }
 0x5c4   :  { %1365 = vmatmul.mubr.msk.f32.vlgmr.msra.gmra.mrb[4].mxu0 %vm58_vm0, %v1355_v41  ;;  %v1254_v41 = vld [vmem:[%s1868_s2 + $0x40] sm:$0xff] }
 0x5c5   :  { %1440 = vmatprep.subr.bf16.mxu1 %v1439_v45  ;;  %1446 = vmatpush3.bf16.msra.mxu0 %v1443_v35 }
 0x5c6   :  { %1442 = vmatpush3.bf16.msra.mxu1 %v1439_v45  ;;  %1448 = vmatprep.subr.bf16.mxu0 %v1447_v38  ;;  %v1256_v45 = vld [vmem:[%s1868_s2 + $0x50] sm:$0xff] }
 0x5c9   :  { %1450 = vmatpush3.bf16.msra.mxu0 %v1447_v38 }
 0x697   :  { %v1366_v46 = vpop.f32.mrb[4].mxu0 }
 0x698   :  { %v587_v47 = vpop.f32.mrb[5].mxu0 }
 0x699   :  { %598 = vrot.lane.b32.xlu1 %v587_v47, %s1573_s29 }
 0x69d   :  { %600 = vrot.lane.b32.xlu1 %v1366_v46, %s1573_s29 }
 0x6a1   :  { %651 = vperm.xlu1 %1471, %v1366_v46   ;;  %v1451_v46 = vpack.c.bf16 %v1255_v42, %v1254_v41 }
 0x6a3   :  { %1452 = vmatprep.subr.bf16.mxu1 %v1451_v46 }
 0x6a5   :  { %647 = vperm.xlu1 %1471, %v587_v47   ;;  %v1257_v47 = vld [vmem:[%s1868_s2 + $0x58] sm:$0xff]  ;;  %s1260_s2 = sld [smem:[#allocation2 + $0x100]] }
 0x70b   :  { %v599_v48 = vpop.permute.xlu1 %598 }
 0x70c   :  { %604 = vxpose.xlu1.b32.start [1/2] (short) (narrow) %v599_v48, 8  ;;  %v1455_v48 = vpack.c.bf16 %v1257_v47, %v1256_v45 }
 0x70f   :  { %v601_v49 = vpop.permute.xlu1 %600 }
 0x710   :  { %605 = vxpose.xlu1.b32.end [2/2] (short) (narrow) %v601_v49, 8  ;;  %v1243_v49 = vld [vmem:[%s1869_s3 + $0x1] ss:$0 sm:$0xff]  ;;  %s1190_s3 = sshll.u32 %s1574_s10, 4  ;;  %s1191_s3 = int_to_ptr.vmem [resolvable:$true] %s1190_s3 }
 0x711   :  { %s1521_s11 = scalar_lea.vmem %s1191_s3, 256  ;;  %p1526_p6 = scmp.lt.s32.totalorder %s1191_s3, %s1191_s3 }
 0x712   :  { %p1522_p5 = scmp.ne.s32.totalorder %s1191_s3, %s1521_s11  ;;  %p1527_p7 = scmp.lt.s32.totalorder %s1521_s11, %s1521_s11 }
 0x714   :  { %p1528_p8 = por %p1527_p7, %p1526_p6 }
 0x716   :  { %p1529_p9 = pnand %p1528_p8, %p1522_p5 }
 0x720   :  { %v652_v50 = vpop.permute.xlu1 %651 }
 0x724   :  { %v648_v53 = vpop.permute.xlu1 %647 }
 0x78c   :  { %v620_v58 = vpop.trf.xlu1 }
 0x78d   :  { %v657_v61 = vrot.slane %v620_v58, %v1682_v31 }
 0x78f   :  { %v658_v62 = vadd.f32 %v657_v61, %v648_v53  ;;  %v659_v63 = vadd.f32 %v657_v61, %v652_v50 }
 0x791   :  { %v660_v0 = vadd.f32 %v658_v62, %v644_v59  ;;  %v661_v1 = vadd.f32 %v659_v63, %v645_v60 }
 0x793   :  { %vm662_vm8 = vcmp.gt.f32.partialorder %v660_v0, 0.0  ;;  %v664_v2 = vmul.f32 0.2, %v660_v0  ;;  %vm663_vm9 = vcmp.gt.f32.partialorder %v661_v1, 0.0  ;;  %v665_v3 = vmul.f32 0.2, %v661_v1 }
 0x795   :  { %v666_v4 = vsel %vm662_vm8, %v660_v0, %v664_v2  ;;  %v667_v5 = vsel %vm663_vm9, %v661_v1, %v665_v3 }
 0x796   :  { %v668_v6 = vsel %vm45_vm2, %v666_v4, -inf  ;;  %v669_v8 = vsel %vm46_vm1, %v667_v5, -inf }
 0x797   :  { %v670_v7 = vsel %vm299_vm5, %v668_v6, -inf  ;;  %v673_v9 = vsel %vm299_vm5, %v669_v8, -inf  ;;  %v1014_v8 = vstv %s1261_s30 }
 0x798   :  { %671 = vmax.xlane.f32.xlu0 %v670_v7  ;;  %v1010_v7 = vstv %s1260_s2 }
 0x79c   :  { %674 = vmax.xlane.f32.xlu0 %v673_v9 }
 0x825   :  { %v672_v10 = vpop.xlane.xlu0 %671 }
 0x826   :  { %v676_v11 = vsub.f32 %v666_v4, %v672_v10  ;;  %v1011_v10 = vmul.f32 %v1010_v7, %v1665_v25 }
 0x828   :  { %v678_v12 = vmul.f32 1.442695, %v676_v11  ;;  %v1012_v11 = vmul.f32 %v1010_v7, %v1670_v27 }
 0x829   :  { %v675_v13 = vpop.xlane.xlu0 %674 }
 0x82a   :  { %1485 = vpow2.f32 %v678_v12  ;;  %v677_v14 = vsub.f32 %v667_v5, %v675_v13  ;;  %v1015_v12 = vmul.f32 %v1675_v28, %v1014_v8  ;;  %v1016_v13 = vmul.f32 %v1680_v29, %v1014_v8 }
 0x82c   :  { %v680_v15 = vmul.f32 1.442695, %v677_v14 }
 0x82e   :  { %1487 = vpow2.f32 %v680_v15  ;;  %v1017_v15 = vadd.f32 %v1015_v12, %v1011_v10 }
 0x834   :  { %v1486_v16 = vpop.eup %1485 }
 0x835   :  { %v682_v17 = vsel %vm45_vm2, %v1486_v16, 0.0  ;;  %v1018_v16 = vadd.f32 %v1016_v13, %v1012_v11 }
 0x836   :  { %v684_v18 = vsel %vm299_vm5, %v682_v17, 0.0 }
 0x837   :  { %685 = vadd.xlane.f32.xlu0 %v684_v18 }
 0x838   :  { %v1488_v19 = vpop.eup %1487 }
 0x839   :  { %v683_v20 = vsel %vm46_vm1, %v1488_v19, 0.0 }
 0x83a   :  { %v687_v21 = vsel %vm299_vm5, %v683_v20, 0.0 }
 0x83b   :  { %688 = vadd.xlane.f32.xlu0 %v687_v21 }
 0x8c4   :  { %v686_v22 = vpop.xlane.xlu0 %685 }
 0x8c5   :  { %1489 = vrcp.f32 %v686_v22 }
 0x8c8   :  { %v689_v23 = vpop.xlane.xlu0 %688 }
 0x8c9   :  { %1491 = vrcp.f32 %v689_v23 }
 0x8cf   :  { %v1490_v24 = vpop.eup %1489 }
 0x8d0   :  { %v692_v26 = vmul.f32 %v1490_v24, %v682_v17 }
 0x8d2   :  { %1371 = vmatprep.mubr.msk.f32.mxu1 %vm299_vm5, %v692_v26 }
 0x8d3   :  { %v1492_v30 = vpop.eup %1491 }
 0x8d4   :  { %v693_v32 = vmul.f32 %v1492_v30, %v683_v20 }
 0x8d6   :  { %1372 = vmatmul.mubr.msk.f32.vlgmr.msra.gmra.mrb[4].mxu1 %vm299_vm5, %v693_v32 }
 0x8d7   :  { %1454 = vmatpush3.bf16.msra.mxu1 %v1451_v46 }
 0x8d8   :  { %1456 = vmatprep.subr.bf16.mxu1 %v1455_v48 }
 0x8db   :  { %1458 = vmatpush3.bf16.msra.mxu1 %v1455_v48 }
 0x9a9   :  { %v1373_v50 = vpop.f32.mrb[4].mxu1 }
 0x9aa   :  { %v780_v51 = vadd.f32 %v1373_v50, %v1243_v49  ;;  %v774_v52 = vpop.f32.mrb[5].mxu1 }
 0x9ab   :  { %v775_v53 = vadd.f32 %v1243_v49, %v774_v52 }
 0x9ac   :  { %v786_v54 = vmin.f32 %v780_v51, 0.0  ;;  %vm784_vm11 = vcmp.gt.f32.partialorder %v780_v51, 0.0 }
 0x9ad   :  { %v785_v55 = vmin.f32 %v775_v53, 0.0  ;;  %vm783_vm10 = vcmp.gt.f32.partialorder %v775_v53, 0.0 }
 0x9ae   :  { %v789_v56 = vmul.f32 1.442695, %v786_v54 }
 0x9af   :  { %v787_v57 = vmul.f32 1.442695, %v785_v55 }
 0x9b0   :  { %1493 = vpow2.f32 %v789_v56 }
 0x9b1   :  { %1495 = vpow2.f32 %v787_v57 }
 0x9ba   :  { %v1494_v58 = vpop.eup %1493 }
 0x9bb   :  { %v1496_v59 = vpop.eup %1495  ;;  %v1247_v60 = vadd.f32 -1.0, %v1494_v58 }
 0x9bc   :  { %v1246_v61 = vadd.f32 -1.0, %v1496_v59 }
 0x9bd   :  { %v1802_v63 = vsel %vm784_vm11, %v780_v51, %v1247_v60 }
 0x9be   :  { %v1800_v62 = vsel %vm783_vm10, %v775_v53, %v1246_v61 }
 0x9bf   :  { %1382 = vmatprep.mubr.msk.f32.mxu0 %vm58_vm0, %v1800_v62 }
 0x9c0   :  { %1383 = vmatmul.mubr.msk.f32.vlgmr.msra.gmra.mrb[6].mxu0 %vm58_vm0, %v1802_v63 }
 0xa93   :  { %v1384_v0 = vpop.f32.mrb[6].mxu0 }
 0xa94   :  { %v874_v1 = vpop.f32.mrb[7].mxu0 }
 0xa95   :  { %v1459_v2 = vpack.c.bf16 %v1384_v0, %v874_v1  ;;  %1393 = vmatprep.mubr.msk.f32.mxu1 %vm58_vm0, %v874_v1  ;;  %v796_v1 = vadd.f32 %v1802_v63, %v1744_v40 }
 0xa96   :  { %1394 = vmatmul.mubr.msk.f32.vlgmr.msra.gmra.mrb[6].mxu1 %vm58_vm0, %v1384_v0 }
 0xa97   :  { %1460 = vmatprep.subr.bf16.mxu0 %v1459_v2 }
 0xa98   :  { %1462 = vmatpush3.bf16.msra.mxu0 %v1459_v2 }
 0xb69   :  { %v1395_v3 = vpop.f32.mrb[6].mxu1 }
 0xb6a   :  { %v960_v4 = vpop.f32.mrb[7].mxu1 }
 0xb6b   :  { %1020 = vperm.xlu1 %1471, %v960_v4   ;;  %971 = vrot.lane.b32.xlu0 %v960_v4, %s1573_s29 }
 0xb6f   :  { %973 = vrot.lane.b32.xlu0 %v1395_v3, %s1573_s29 }
 0xb73   :  { %1024 = vperm.xlu0 %1472, %v1395_v3   ;;  %v795_v3 = vadd.f32 %v1800_v62, %v1742_v39 }
 0xbdd   :  { %v972_v5 = vpop.permute.xlu0 %971 }
 0xbde   :  { %977 = vxpose.xlu0.b32.start [1/2] (short) (narrow) %v972_v5, 8 }
 0xbe1   :  { %v974_v6 = vpop.permute.xlu0 %973 }
 0xbe2   :  { %978 = vxpose.xlu0.b32.end [2/2] (short) (narrow) %v974_v6, 8 }
 0xbea   :  { %v1021_v18 = vpop.permute.xlu1 %1020 }
 0xbf2   :  { %v1025_v9 = vpop.permute.xlu0 %1024 }
 0xc5e   :  { %v993_v14 = vpop.trf.xlu0 }
 0xc5f   :  { %v1030_v17 = vrot.slane %v993_v14, %v1682_v31 }
 0xc61   :  { %v1031_v19 = vadd.f32 %v1030_v17, %v1021_v18  ;;  %v1032_v20 = vadd.f32 %v1030_v17, %v1025_v9 }
 0xc63   :  { %v1033_v21 = vadd.f32 %v1031_v19, %v1017_v15  ;;  %v1034_v22 = vadd.f32 %v1032_v20, %v1018_v16 }
 0xc65   :  { %vm1036_vm12 = vcmp.gt.f32.partialorder %v1034_v22, 0.0  ;;  %v1038_v23 = vmul.f32 0.2, %v1034_v22  ;;  %vm1035_vm13 = vcmp.gt.f32.partialorder %v1033_v21, 0.0  ;;  %v1037_v25 = vmul.f32 0.2, %v1033_v21 }
 0xc67   :  { %v1040_v24 = vsel %vm1036_vm12, %v1034_v22, %v1038_v23  ;;  %v1039_v27 = vsel %vm1035_vm13, %v1033_v21, %v1037_v25 }
 0xc68   :  { %v1042_v28 = vsel %vm46_vm1, %v1040_v24, -inf  ;;  %v1041_v29 = vsel %vm45_vm2, %v1039_v27, -inf }
 0xc69   :  { %v1046_v26 = vsel %vm299_vm5, %v1042_v28, -inf  ;;  %v1043_v31 = vsel %vm299_vm5, %v1041_v29, -inf }
 0xc6a   :  { %1047 = vmax.xlane.f32.xlu0 %v1046_v26  ;;  %1044 = vmax.xlane.f32.xlu1 %v1043_v31 }
 0xcf7   :  { %v1048_v30 = vpop.xlane.xlu0 %1047  ;;  %v1045_v32 = vpop.xlane.xlu1 %1044 }
 0xcf8   :  { %v1050_v33 = vsub.f32 %v1040_v24, %v1048_v30  ;;  %v1049_v34 = vsub.f32 %v1039_v27, %v1045_v32 }
 0xcfa   :  { %v1053_v35 = vmul.f32 1.442695, %v1050_v33  ;;  %v1051_v36 = vmul.f32 1.442695, %v1049_v34 }
 0xcfc   :  { %1497 = vpow2.f32 %v1053_v35 }
 0xcfd   :  { %1499 = vpow2.f32 %v1051_v36 }
 0xd06   :  { %v1498_v37 = vpop.eup %1497 }
 0xd07   :  { %v1500_v38 = vpop.eup %1499  ;;  %v1056_v45 = vsel %vm46_vm1, %v1498_v37, 0.0 }
 0xd08   :  { %v1055_v41 = vsel %vm45_vm2, %v1500_v38, 0.0  ;;  %v1060_v46 = vsel %vm299_vm5, %v1056_v45, 0.0 }
 0xd09   :  { %v1057_v42 = vsel %vm299_vm5, %v1055_v41, 0.0 }
 0xd0a   :  { %1058 = vadd.xlane.f32.xlu1 %v1057_v42 }
 0xd0e   :  { %1061 = vadd.xlane.f32.xlu1 %v1060_v46 }
 0xd97   :  { %v1059_v47 = vpop.xlane.xlu1 %1058 }
 0xd98   :  { %1501 = vrcp.f32 %v1059_v47 }
 0xd9b   :  { %v1062_v48 = vpop.xlane.xlu1 %1061 }
 0xd9c   :  { %1503 = vrcp.f32 %v1062_v48 }
 0xda2   :  { %v1502_v49 = vpop.eup %1501 }
 0xda3   :  { %v1065_v50 = vmul.f32 %v1502_v49, %v1055_v41 }
 0xda5   :  { %1400 = vmatprep.mubr.msk.f32.mxu0 %vm299_vm5, %v1065_v50 }
 0xda6   :  { %v1504_v51 = vpop.eup %1503 }
 0xda7   :  { %v1066_v44 = vmul.f32 %v1504_v51, %v1056_v45 }
 0xda9   :  { %1401 = vmatmul.mubr.msk.f32.vlgmr.msra.gmra.mrb[8].mxu0 %vm299_vm5, %v1066_v44 }
 0xe7c   :  { %v1402_v52 = vpop.f32.mrb[8].mxu0 }
 0xe7d   :  { %v1153_v53 = vadd.f32 %v1402_v52, %v1263_v43  ;;  %v1147_v54 = vpop.f32.mrb[9].mxu0 }
 0xe7e   :  { %v1148_v55 = vadd.f32 %v1263_v43, %v1147_v54 }
 0xe7f   :  { %v1159_v56 = vmin.f32 %v1153_v53, 0.0  ;;  %vm1157_vm14 = vcmp.gt.f32.partialorder %v1153_v53, 0.0 }
 0xe80   :  { %v1158_v57 = vmin.f32 %v1148_v55, 0.0  ;;  %vm1156_vm15 = vcmp.gt.f32.partialorder %v1148_v55, 0.0 }
 0xe81   :  { %v1162_v58 = vmul.f32 1.442695, %v1159_v56 }
 0xe82   :  { %v1160_v59 = vmul.f32 1.442695, %v1158_v57 }
 0xe83   :  { %1505 = vpow2.f32 %v1162_v58 }
 0xe84   :  { %1507 = vpow2.f32 %v1160_v59 }
 0xe8d   :  { %v1506_v60 = vpop.eup %1505 }
 0xe8e   :  { %v1508_v61 = vpop.eup %1507  ;;  %v1267_v0 = vadd.f32 -1.0, %v1506_v60 }
 0xe8f   :  { %v1266_v2 = vadd.f32 -1.0, %v1508_v61 }
 0xe90   :  { %v1167_v4 = vsel %vm1157_vm14, %v1153_v53, %v1267_v0 }
 0xe91   :  { %v1169_v5 = vadd.f32 %v1167_v4, %v796_v1  ;;  %v1166_v6 = vsel %vm1156_vm15, %v1148_v55, %v1266_v2 }
 0xe92   :  { %v1168_v7 = vadd.f32 %v1166_v6, %v795_v3 }
 0xe93   :  { %v1173_v8 = vsel %vm58_vm0, %v1169_v5, 0.0  ;;  %1171 = vst.msk [vmem:[#allocation5 + $0x8] sm:$0xff] %vm58_vm0, %v1169_v5 }
 0xe94   :  { %v1172_v9 = vsel %vm58_vm0, %v1168_v7, 0.0  ;;  %1170 = vst.msk [vmem:[#allocation5] sm:$0xff] %vm58_vm0, %v1168_v7 }
 0xe95   :  { %1532 = shalt.err (!%p1529_p9)
}
 0xe96   :  { %s1533_s6 = scalar_lea.hbm %s1873_s7, 256 }
 0xe97   :  { %p1534_p10 = scmp.ne.s32.totalorder %s1873_s7, %s1533_s6  ;;  %p1537_p11 = scmp.lt.u32.totalorder %s1533_s6, %s1873_s7 }
 0xe99   :  { %p1539_p12 = pnand %p1537_p11, %p1534_p10 }
 0xe9b   :  { %1542 = shalt.err (!%p1539_p12)
}
 0xe9c   :  { %s1575_s17 = smov 128   ;;  %s1576_s18 = smov 8   ;;  %v1174_v39 = vadd.f32 %v1173_v8, %v1172_v9  ;;  %vm1183_vm0 = vcmask 253952  }
 0xe9d   :  { %1196 = dma.vmem_to_hbm [thread:$0]  %s1191_s3, 256, %s1873_s7, [#allocation3], %s1575_s17, %s1575_s17, %s1576_s18  }
 0xe9e   :  { %v1175_v40 = vrot.slane %v1174_v39, 4  ;;  %s1577_s20 = smov [#allocation6]  }
 0xe9f   :  { %s1203_s21 = sshll.u32 %s1577_s20, 4  ;;  %s1204_s21 = int_to_ptr.vmem [resolvable:$true] %s1203_s21 }
 0xea0   :  { %v1176_v62 = vadd.f32 %v1175_v40, %v1174_v39  ;;  %s1543_s22 = scalar_lea.vmem %s1204_s21, 16  ;;  %s1547_s23 = scalar_lea.vmem %s1204_s21, 32 }
 0xea1   :  { %p1544_p13 = scmp.ne.s32.totalorder %s1204_s21, %s1543_s22  ;;  %p1548_p0 = scmp.lt.s32.totalorder %s1204_s21, %s1204_s21 }
 0xea2   :  { %v1177_v63 = vrot.slane %v1176_v62, 2  ;;  %p1549_p1 = scmp.lt.s32.totalorder %s1547_s23, %s1543_s22 }
 0xea4   :  { %v1178_v10 = vadd.f32 %v1177_v63, %v1176_v62  ;;  %p1550_p2 = por %p1549_p1, %p1548_p0 }
 0xea6   :  { %v1179_v11 = vrot.slane %v1178_v10, 1  ;;  %p1551_p3 = pnand %p1550_p2, %p1544_p13 }
 0xea8   :  { %v1180_v12 = vadd.f32 %v1179_v11, %v1178_v10 }
 0xeaa   :  { %v1182_v13 = vmul.f32 0.0625, %v1180_v12 }
 0xeac   :  { %1184 = vst.msk [vmem:[#allocation6] sm:$0x1] %vm1183_vm0, %v1182_v13 }
 0xead   :  { %1554 = shalt.err (!%p1551_p3)
}
 0xeae   :  { %s1555_s25 = scalar_lea.hbm %s1874_s8, 16 }
 0xeaf   :  { %p1556_p4 = scmp.ne.s32.totalorder %s1874_s8, %s1555_s25  ;;  %p1559_p5 = scmp.lt.u32.totalorder %s1555_s25, %s1874_s8 }
 0xeb1   :  { %p1561_p6 = pnand %p1559_p5, %p1556_p4 }
 0xeb3   :  { %1564 = shalt.err (!%p1561_p6)
}
 0xeb4   :  { %1206 = dma.vmem_to_hbm [thread:$0]  %s1204_s21, 16, %s1874_s8, [#allocation7]  }
 0xeb5   :  { %1567 = dma.done.wait [#allocation3], 256  }
 0xeb6   :  { %1568 = vsyncadd [#allocation3], 4294967040 }
 0xeb7   :  { %1569 = dma.done.wait [#allocation7], 16  }
 0xeb8   :  { %1570 = vsyncadd [#allocation7], 4294967280 }
 0xeb9   :  { %1213 = vsyncpa [#allocation3], 1 }
 0xeba   :  { %1214 = vsyncpa [#allocation7], 1 }
 0xebb   :  { %1215 = vsyncpa [#allocation4], 1 }

</bundles_post_ra>
